<compile_context>
chip_gen: v5e
topology: v5e:2x2
jax: 0.10.0
libtpu: 0.0.40
codegen_flags: <defaults>
</compile_context>

<pallas_src>
import math

import jax
import jax.numpy as jnp
from jax.experimental import pallas as pl
from jax.experimental.pallas import tpu as pltpu


_VMEM_BUDGET = 48 * 1024 * 1024      # conservative working-set budget (fits v7x 64 MiB)
_VMEM_LIMIT_CAP = 56 * 1024 * 1024   # scoped-VMEM limit cap (safe on v5e/v6e/v7x)


def _round_up(n, m):
    return -(-n // m) * m


def _cat_combine_kernel(x_ref, y_ref, w_ref, b_ref, o_ref):
    """out = x @ W_x + y @ W_y + b   (== cat(x, y) @ W + b, concat fused away)."""
    acc = jnp.dot(x_ref[...], w_ref[0], preferred_element_type=jnp.float32)
    acc += jnp.dot(y_ref[...], w_ref[1], preferred_element_type=jnp.float32)
    acc += b_ref[...]
    o_ref[...] = acc.astype(o_ref.dtype)


def cat_combine_pallas(x, y, weight, bias, *, block_rows=None, block_cols=512,
                       compute_dtype=None):
    """x, y: (..., C); weight: (2C, C) [torch weight.T]; bias: (C,). Returns (..., C)."""
    C = x.shape[-1]
    assert weight.shape == (2 * C, C), (
        "weight must be the transposed torch layout (2C, C), i.e. torch_weight.T")
    assert bias.shape == (C,)

    lead = x.shape[:-1]
    R = int(math.prod(lead)) if lead else 1
    out_dtype = x.dtype

    cdt = jnp.dtype(compute_dtype) if compute_dtype is not None else jnp.dtype(x.dtype)
    in_isz = cdt.itemsize
    out_isz = jnp.dtype(out_dtype).itemsize
    sub = 16 if in_isz == 2 else 8            # sublane granularity (bf16 vs f32)

    x2 = x.reshape(R, C).astype(cdt)
    y2 = y.reshape(R, C).astype(cdt)
    # (2C, C) -> (2, C, C) is a free contiguous split: w3[0] == W[:C], w3[1] == W[C:].
    w3 = weight.reshape(2, C, C).astype(cdt)
    b2 = bias.reshape(1, C).astype(jnp.float32)

    # Lane-dense output: pad the output-column axis up to a multiple of 128.
    Np = _round_up(C, 128)
    if Np != C:
        w3 = jnp.pad(w3, ((0, 0), (0, 0), (0, Np - C)))
        b2 = jnp.pad(b2, ((0, 0), (0, Np - C)))

    # ---- column (output) tiling: stream weights when C is large -----------------
    tn = Np if Np <= block_cols else block_cols          # multiple of 128
    n_col = pl.cdiv(Np, tn)

    # ---- row tiling derived from the VMEM budget ---------------------------------
    w_bufs = 1 if n_col == 1 else 2          # resident -> single buffer, streamed -> double
    w_vmem = w_bufs * 2 * C * tn * in_isz
    b_vmem = w_bufs * tn * 4
    per_row = 2 * (2 * C * in_isz + tn * out_isz)        # x + y + out, double-buffered
    avail = max(_VMEM_BUDGET - w_vmem - b_vmem, per_row * sub)

    tr_cap = block_rows if block_rows is not None else 1024
    tr = max(sub, min(avail // per_row, tr_cap, _round_up(R, sub)))
    tr = (tr // sub) * sub
    if tr >= 512:                            # MXU-friendly cadence for big tiles
        tr = (tr // 256) * 256
    # v7x: 2 TensorCores are sharded over the parallel grid axes -> ensure at
    # least two grid steps whenever the problem is big enough to split.
    if R > sub and n_col == 1 and pl.cdiv(R, tr) < 2:
        tr = _round_up(pl.cdiv(R, 2), sub)
    n_row = pl.cdiv(R, tr)

    est_vmem = w_vmem + b_vmem + 2 * (2 * tr * C * in_isz + tr * tn * out_isz)
    vmem_limit = int(min(max(2 * est_vmem, 32 << 20), _VMEM_LIMIT_CAP))

    if n_col == 1:
        # Truly resident operands: constant index_map, so drop the useless 2nd buffer.
        w_spec = pl.BlockSpec((2, C, tn), lambda j, i: (0, 0, j),
                              pipeline_mode=pl.Buffered(1))
        b_spec = pl.BlockSpec((1, tn), lambda j, i: (0, j),
                              pipeline_mode=pl.Buffered(1))
    else:
        w_spec = pl.BlockSpec((2, C, tn), lambda j, i: (0, 0, j))
        b_spec = pl.BlockSpec((1, tn), lambda j, i: (0, j))

    out_p = pl.pallas_call(
        _cat_combine_kernel,
        out_shape=jax.ShapeDtypeStruct((R, Np), out_dtype),
        grid_spec=pltpu.PrefetchScalarGridSpec(
            num_scalar_prefetch=0,
            # Column axis OUTER so each weight column tile is fetched once and
            # stays resident across the (fast) row axis.
            grid=(n_col, n_row),
            in_specs=[
                pl.BlockSpec((tr, C), lambda j, i: (i, 0)),   # x rows
                pl.BlockSpec((tr, C), lambda j, i: (i, 0)),   # y rows
                w_spec,                                       # [W_x; W_y] stacked
                b_spec,                                       # bias
            ],
            out_specs=pl.BlockSpec((tr, tn), lambda j, i: (i, j)),
        ),
        compiler_params=pltpu.CompilerParams(
            dimension_semantics=("parallel", "parallel"),
            vmem_limit_bytes=vmem_limit),
    )(x2, y2, w3, b2)

    out = out_p[:, :C] if Np != C else out_p
    return out.reshape(*lead, C)


def cat_combine_reference(x, y, weight, bias):
    """Pure-JAX reference: Linear(cat((x, y), -1))."""
    return jnp.concatenate([x, y], axis=-1) @ weight + bias


def init_params(key, C):
    """nn.Linear(C*2, C) init (PyTorch convention, stored transposed as (2C, C))."""
    kw, kb = jax.random.split(key)
    lim = 1.0 / math.sqrt(2 * C)
    weight = jax.random.uniform(kw, (2 * C, C), jnp.float32, -lim, lim)
    bias = jax.random.uniform(kb, (C,), jnp.float32, -lim, lim)
    return weight, bias


if __name__ == "__main__":
    # Small shapes consistent with the module: batch=2, seq=8, hidden C=32.
    B, S, C = 2, 8, 32

    key = jax.random.PRNGKey(0)
    kx, ky, kp = jax.random.split(key, 3)

    x = jax.random.normal(kx, (B, S, C), jnp.float32)
    y = jax.random.normal(ky, (B, S, C), jnp.float32)
    weight, bias = init_params(kp, C)

    ref = cat_combine_reference(x, y, weight, bias)

    # f32 path (exact match to reference).
    out = jax.block_until_ready(cat_combine_pallas(x, y, weight, bias))
    assert out.shape == (B, S, C)
    assert jnp.allclose(out, ref, atol=1e-5, rtol=1e-5), "f32 mismatch vs JAX reference"

    # bf16 inputs/weights with f32 accumulation (halves HBM traffic at real shapes).
    out_bf = jax.block_until_ready(
        cat_combine_pallas(x, y, weight, bias, compute_dtype=jnp.bfloat16))
    assert jnp.allclose(out_bf, ref, atol=5e-2, rtol=5e-2), "bf16 mismatch vs JAX reference"

    # Ragged row count: last row tile is partial -> masked stores, still correct.
    xr = jax.random.normal(kx, (2, 9, C), jnp.float32)
    yr = jax.random.normal(ky, (2, 9, C), jnp.float32)
    out_r = jax.block_until_ready(cat_combine_pallas(xr, yr, weight, bias))
    assert jnp.allclose(out_r, cat_combine_reference(xr, yr, weight, bias),
                        atol=1e-5, rtol=1e-5), "ragged-R mismatch vs JAX reference"

    print("KERNEL_OK")
</pallas_src>

<mosaic_0001>
module attributes {stable_mosaic.version = 11 : i64} {
  func.func @_cat_combine_kernel(%arg0: i32, %arg1: i32, %arg2: memref<8x32xf32, #tpu.memory_space<vmem>>, %arg3: memref<8x32xf32, #tpu.memory_space<vmem>>, %arg4: memref<2x32x128xf32, #tpu.memory_space<vmem>>, %arg5: memref<1x128xf32, #tpu.memory_space<vmem>>, %arg6: memref<8x128xf32, #tpu.memory_space<vmem>>) attributes {dimension_semantics = [#tpu.dimension_semantics<parallel>, #tpu.dimension_semantics<parallel>], iteration_bounds = array<i64: 1, 2>, scalar_prefetch = 0 : i64, scratch_operands = 0 : i64, tpu.core_type = #tpu.core_type<tc>, window_params = [{transform_indices = @transform_0, window_bounds = array<i64: 8, 32>}, {transform_indices = @transform_1, window_bounds = array<i64: 8, 32>}, {pipeline_mode = #tpu.pipeline_mode<synchronous>, transform_indices = @transform_2, window_bounds = array<i64: 2, 32, 128>}, {pipeline_mode = #tpu.pipeline_mode<synchronous>, transform_indices = @transform_3, window_bounds = array<i64: 1, 128>}, {transform_indices = @transform_4, window_bounds = array<i64: 8, 128>}]} {
    %c0 = arith.constant 0 : index
    %c0_0 = arith.constant 0 : index
    %0 = vector.load %arg2[%c0, %c0_0] : memref<8x32xf32, #tpu.memory_space<vmem>>, vector<8x32xf32>
    %c0_1 = arith.constant 0 : index
    %c0_2 = arith.constant 0 : index
    %c0_3 = arith.constant 0 : index
    %1 = vector.load %arg4[%c0_1, %c0_2, %c0_3] : memref<2x32x128xf32, #tpu.memory_space<vmem>>, vector<1x32x128xf32>
    %2 = vector.shape_cast %1 : vector<1x32x128xf32> to vector<32x128xf32>
    %cst = arith.constant dense<0.000000e+00> : vector<8x128xf32>
    %3 = tpu.matmul %0, %2, %cst {dimension_numbers = #tpu.dot_dimension_numbers<[1], [0], [0], [1], [0, 0, 1, 1], [], []>} : vector<8x32xf32>, vector<32x128xf32>, vector<8x128xf32> -> vector<8x128xf32>
    %c0_4 = arith.constant 0 : index
    %c0_5 = arith.constant 0 : index
    %4 = vector.load %arg3[%c0_4, %c0_5] : memref<8x32xf32, #tpu.memory_space<vmem>>, vector<8x32xf32>
    %c1 = arith.constant 1 : index
    %c0_6 = arith.constant 0 : index
    %c0_7 = arith.constant 0 : index
    %5 = vector.load %arg4[%c1, %c0_6, %c0_7] : memref<2x32x128xf32, #tpu.memory_space<vmem>>, vector<1x32x128xf32>
    %6 = vector.shape_cast %5 : vector<1x32x128xf32> to vector<32x128xf32>
    %cst_8 = arith.constant dense<0.000000e+00> : vector<8x128xf32>
    %7 = tpu.matmul %4, %6, %cst_8 {dimension_numbers = #tpu.dot_dimension_numbers<[1], [0], [0], [1], [0, 0, 1, 1], [], []>} : vector<8x32xf32>, vector<32x128xf32>, vector<8x128xf32> -> vector<8x128xf32>
    %8 = arith.addf %3, %7 : vector<8x128xf32>
    %c0_9 = arith.constant 0 : index
    %c0_10 = arith.constant 0 : index
    %9 = vector.load %arg5[%c0_9, %c0_10] : memref<1x128xf32, #tpu.memory_space<vmem>>, vector<1x128xf32>
    %10 = vector.broadcast %9 : vector<1x128xf32> to vector<8x128xf32>
    %11 = arith.addf %8, %10 : vector<8x128xf32>
    %c0_11 = arith.constant 0 : index
    %c0_12 = arith.constant 0 : index
    %12 = vector.load %arg6[%c0_11, %c0_12] : memref<8x128xf32, #tpu.memory_space<vmem>>, vector<8x128xf32>
    tpu.vector_store %arg6[%c0_11, %c0_12], %11 {strides = array<i32>} : memref<8x128xf32, #tpu.memory_space<vmem>>, vector<8x128xf32>,
    return
  }
  func.func @transform_0(%arg0: i32, %arg1: i32) -> (i32, i32) {
    %c0_i32 = arith.constant 0 : i32
    %c0_i32_0 = arith.constant 0 : i32
    return %arg1, %c0_i32 : i32, i32
  }
  func.func @transform_1(%arg0: i32, %arg1: i32) -> (i32, i32) {
    %c0_i32 = arith.constant 0 : i32
    %c0_i32_0 = arith.constant 0 : i32
    return %arg1, %c0_i32 : i32, i32
  }
  func.func @transform_2(%arg0: i32, %arg1: i32) -> (i32, i32, i32) {
    %c0_i32 = arith.constant 0 : i32
    %c0_i32_0 = arith.constant 0 : i32
    %c0_i32_1 = arith.constant 0 : i32
    return %c0_i32, %c0_i32_0, %arg0 : i32, i32, i32
  }
  func.func @transform_3(%arg0: i32, %arg1: i32) -> (i32, i32) {
    %c0_i32 = arith.constant 0 : i32
    %c0_i32_0 = arith.constant 0 : i32
    return %c0_i32, %arg0 : i32, i32
  }
  func.func @transform_4(%arg0: i32, %arg1: i32) -> (i32, i32) {
    %c0_i32 = arith.constant 0 : i32
    return %arg1, %arg0 : i32, i32
  }
}

</mosaic_0001>

<bundles_post_ra>
// kernel: tpu_custom_call.1
= control target key start
LH: loop header
LB: loop body
LE: loop exit
PB: predicated region body
PF: predicated region fallthrough
CT: control target
= control target key end

     0   :  { %s983_s0 = inlined_call_operand.hbm [shape: f32[16,32], index: 0, kind: input, shape index: {}]   ;;  %s984_s1 = inlined_call_operand.hbm [shape: f32[16,32], index: 1, kind: input, shape index: {}]   ;;  %s985_s2 = inlined_call_operand.hbm [shape: f32[2,32,128], index: 2, kind: input, shape index: {}]   ;;  %s986_s3 = inlined_call_operand.vmem [shape: f32[1,128], index: 3, kind: input, shape index: {}]   ;;  %s987_s4 = inlined_call_operand.hbm [shape: f32[16,128], index: 4, kind: output, shape index: {}]  }
   0x1   :  { %991 = sst [smem:[#allocation17_spill]] %s985_s2 }
   0x2   :  { %9 = vsyncpa [#allocation3], 0 }
   0x3   :  { %11 = vsyncpa [#allocation3 + $0x1], 0 }
   0x4   :  { %12 = vsyncpa [#allocation6], 0 }
   0x5   :  { %14 = vsyncpa [#allocation6 + $0x1], 0 }
   0x6   :  { %15 = vsyncpa [#allocation4], 0 }
   0x7   :  { %17 = vsyncpa [#allocation4 + $0x1], 0  ;;  %s823_s15 = smov 0   ;;  %s825_s16 = smov 0  }
   0x8   :  { %s827_s17 = smov 0   ;;  %s829_s18 = smov 0  }
   0x9   :  { %s831_s19 = smov 0   ;;  %s833_s20 = smov 0  }
   0xa LB: > { %992 = sst [smem:[#allocation13_spill]] %s781_s17  ;;  %s854_s21 = sadd.s32 4294967295, %s793_s20   ;;  %s793_s20 = sphi %s833_s20, %s23_s20   ;;  %s789_s19 = sphi %s831_s19, %s1005_s19   ;;  %s785_s18 = sphi %s829_s18, %s1004_s18   ;;  %s781_s17 = sphi %s827_s17, %s1003_s17   ;;  %s777_s16 = sphi %s825_s16, %s1007_s16   ;;  %s773_s15 = sphi %s823_s15, %s1006_s15  }
   0xb   : > { %993 = sst [smem:[#allocation14_spill]] %s789_s19  ;;  %p513_p0 = scmp.ge.s32.totalorder %s793_s20, 1 }
   0xc   : > { %p56_p1 = scmp.eq.s32.totalorder %s854_s21, 0  ;;  %p172_p2 = scmp.lt.s32.totalorder %s793_s20, 3 }
   0xd   : > { %s994_s2 = sld [smem:[#allocation17_spill]]  ;;  %s795_s26 = smov [#allocation7]  }
   0xe   : > { %p862_p3 = pnand %p513_p0, %p172_p2  ;;  %s187_s27 = sshll.u32 %s795_s26, 4  ;;  %s188_s27 = int_to_ptr.vmem [resolvable:$true] %s187_s27 }
   0xf   : > { %p516_p6 = scmp.ge.s32.totalorder %s793_s20, 2  ;;  %s796_s28 = smov 128  }
  0x10   : > { %p542_p4 = pneg %p862_p3  ;;  %s797_s29 = smov 8  }
  0x11   : > { %s512_s30 = sadd.s32 4294967294, %s793_s20   ;;  %s32_s5 = sadd.s32 1, %s789_s19 }
  0x12   : > { %p543_p5 = pnand %p542_p4, %p56_p1  ;;  %s42_s6 = sadd.s32 1, %s781_s17 }
  0x13   : > { %s185_s24 = sshll.u32 %s994_s2, 4  ;;  %p33_p7 = scmp.ge.s32.totalorder %s32_s5, 2  ;;  %s186_s24 = int_to_ptr.hbm [resolvable:$true] %s185_s24 }
  0x14   : > { %545 = dma.hbm_to_vmem [thread:$0]  (!%p543_p5), %s186_s24, 1024, %s188_s27, [#allocation6], %s796_s28, %s796_s28, %s797_s29  }
  0x15   : > { %p49_p8 = scmp.ne.s32.totalorder %s781_s17, %s777_s16  ;;  %p50_p9 = scmp.eq.s32.totalorder %s793_s20, 0 }
  0x16   : > { %p55_p10 = scmp.ne.s32.totalorder %s777_s16, %s773_s15  ;;  %s1009_s5 = smov (%p33_p7, %s32_s5), 0 }
  0x17   : > { %996 = sst [smem:[#allocation15_spill]] %s1009_s5  ;;  %p881_p11 = por %p50_p9, %p49_p8 }
  0x18   : > { %p887_p12 = por %p56_p1, %p55_p10  ;;  %s39_s9 = ssub.s32 %s789_s19, %s1009_s5 }
  0x19   : > { %p159_p13 = scmp.eq.s32.totalorder %s854_s21, 1  ;;  %p40_p0 = scmp.eq.s32.totalorder %s39_s9, 0 }
  0x1a   : > { %p165_p2 = scmp.eq.s32.totalorder %s512_s30, 1  ;;  %p558_p5 = scmp.lt.s32.totalorder %s793_s20, 2 }
  0x1b   : > { %p894_p4 = por %p159_p13, %p49_p8  ;;  %s207_s13 = sand.u32 1, %s781_s17  }
  0x1c   : > { %s900_s11 = scalar_select %p40_p0, %s781_s17, %s42_s6  }
  0x1d   : > { %p902_p7 = por %p165_p2, %p55_p10  ;;  %s517_s14 = sshll.u32 %s207_s13, 3 }
  0x1e   : > { %1000 = sst [smem:[#allocation16_spill]] %s900_s11  ;;  %s518_s22 = sshll.u32 %s789_s19, 3 }
  0x1f   : > { %s215_s26 = scalar_lea.hbm %s983_s0, %s518_s22  ;;  %s211_s27 = scalar_lea.vmem [#allocation2], %s517_s14 }
  0x20   : > { %s219_s28 = sshll.u32 %s211_s27, 4  ;;  %s217_s29 = sshll.u32 %s215_s26, 4  ;;  %s220_s28 = int_to_ptr.vmem [resolvable:$true] %s219_s28  ;;  %s218_s29 = int_to_ptr.hbm [resolvable:$true] %s217_s29 }
  0x21   : > { %p547_p8 = pnand %p558_p5, %p881_p11  ;;  %s234_s9 = scalar_lea.hbm %s984_s1, %s518_s22 }
  0x22   : > { %s226_s2 = sand.u32 1, %s793_s20   ;;  %s208_s5 = scalar_lea.sflag [#allocation3], %s207_s13 }
  0x23   : > { %549 = dma.hbm_to_vmem [thread:$0]  (!%p547_p8), %s218_s29, 128, %s220_s28, %s208_s5  }
  0x24   : > { %s236_s11 = sshll.u32 %s234_s9, 4  ;;  %s230_s19 = scalar_lea.vmem [#allocation5], %s517_s14  ;;  %s237_s11 = int_to_ptr.hbm [resolvable:$true] %s236_s11 }
  0x25   : > { %s238_s17 = sshll.u32 %s230_s19, 4  ;;  %s227_s23 = scalar_lea.sflag [#allocation6], %s226_s2  ;;  %s239_s17 = int_to_ptr.vmem [resolvable:$true] %s238_s17 }
  0x26   : > { %552 = dma.hbm_to_vmem [thread:$0]  (!%p547_p8), %s237_s11, 128, %s239_s17, %s227_s23  }
  0x27   : > { %247 = sbr.rel (%p862_p3) target bundleno = 192 (0xc0), region = 36  ;;  %s920_s7 = sand.u32 (!%p862_p3), 1, %s777_s16  }
  0x28   : > { %s923_s22 = sshll.u32 (!%p862_p3), %s920_s7, 3  ;;  %s250_s5 = scalar_lea.sflag (!%p862_p3), [#allocation3], %s920_s7 }
  0x29   : > { %s253_s13 = scalar_lea.vmem (!%p862_p3), [#allocation2], %s923_s22 }
  0x2c   : > { %756 = dma.done.wait (%p887_p12), %s250_s5, 128  }
  0x2d   : > { %758 = vsyncadd (%p887_p12), %s250_s5, 4294967168  ;;  %s259_s2 = sand.u32 1, %s854_s21   ;;  %s263_s19 = scalar_lea.vmem [#allocation5], %s923_s22 }
  0x2e   : > { %s260_s17 = scalar_lea.sflag [#allocation6], %s259_s2 }
  0x2f   : > { %760 = dma.done.wait (%p887_p12), %s260_s17, 128  }
  0x30   : > { %762 = vsyncadd (%p887_p12), %s260_s17, 4294967168 }
  0x31   : > { %764 = dma.done.wait (%p56_p1), [#allocation6], 1024  }
  0x32   : > { %766 = vsyncadd (%p56_p1), [#allocation6], 4294966272  ;;  %v315_v0 = vld [vmem:[#allocation7 + $0x38] sm:$0xff]  ;;  %v314_v2 = vld [vmem:[#allocation7 + $0x30] sm:$0xff]  ;;  %vm316_vm0 = vcmask 261120   ;;  %s529_s21 = sshll.u32 %s785_s18, 3 }
  0x33   : > { %v309_v1 = vld [vmem:[#allocation7 + $0x18] sm:$0xff]  ;;  %332 = vmatpush.msra.mxu0 %v315_v0  ;;  %v308_v3 = vld [vmem:[#allocation7 + $0x10] sm:$0xff]  ;;  %v313_v4 = vld [vmem:[#allocation7 + $0x28] sm:$0xff]  ;;  %s381_s11 = scalar_lea.hbm %s987_s4, %s529_s21  ;;  %s301_s26 = scalar_lea.vmem [#allocation8], %s923_s22 }
  0x34   : > { %355 = vmatpush.msra.mxu1 %v309_v1  ;;  %v307_v5 = vld [vmem:[#allocation7 + $0x8] sm:$0xff]  ;;  %v312_v6 = vld [vmem:[#allocation7 + $0x20] sm:$0xff]  ;;  %v310_v8 = vld [vmem:[%s263_s19] sm:$0xff]  ;;  %s383_s27 = sshll.u32 %s301_s26, 4  ;;  %s385_s28 = sshll.u32 %s381_s11, 4  ;;  %s384_s27 = int_to_ptr.vmem [resolvable:$true] %s383_s27  ;;  %s386_s28 = int_to_ptr.hbm [resolvable:$true] %s385_s28 }
  0x35   : > { %333 = vmatpush.msra.mxu0 %v314_v2  ;;  %v306_v7 = vld [vmem:[#allocation7] sm:$0xff]  ;;  %s370_s18 = scalar_lea.sflag [#allocation4], %s920_s7  ;;  %s717_s29 = sshra.s32 %s386_s28, 4  ;;  %s718_s29 = int_to_ptr.hbm [resolvable:$true] %s717_s29 }
  0x36   : > { %356 = vmatpush.msra.mxu1 %v308_v3  ;;  %v305_v9 = vld [vmem:[%s253_s13] sm:$0xff]  ;;  %s719_s30 = scalar_lea.hbm %s718_s29, 8  ;;  %s723_s23 = scalar_lea.hbm %s987_s4, 16 }
  0x37   : > { %334 = vmatpush.msra.mxu0 %v313_v4  ;;  %v612_v10 = vld [vmem:[%s986_s3] ss:$0 sm:$0xff]  ;;  %p720_p1 = scmp.ne.s32.totalorder %s718_s29, %s719_s30  ;;  %p724_p10 = scmp.lt.s32.totalorder %s718_s29, %s987_s4 }
  0x38   : > { %357 = vmatpush.msra.mxu1 %v307_v5  ;;  %p725_p11 = scmp.lt.s32.totalorder %s723_s23, %s719_s30 }
  0x39   : > { %335 = vmatpush.msra.mxu0 %v312_v6  ;;  %p721_p3 = pnand %p720_p1, %p894_p4 }
  0x3a   : > { %358 = vmatpush.msra.mxu1 %v306_v7  ;;  %526 = vmatmul.msk.f32.vlgmr.msra.gmra.mxu0 %vm316_vm0, %v310_v8  ;;  %p726_p12 = por %p725_p11, %p724_p10 }
  0x3b   : > { %527 = vmatmul.msk.f32.vlgmr.msra.gmra.mxu1 %vm316_vm0, %v305_v9  ;;  %p722_p9 = pneg %p721_p3 }
  0x3d   : > { %p727_p13 = pnand %p726_p12, %p722_p9 }
  0xb7   : > { %v337_v11 = vpop.f32.mrf.mxu0 }
  0xb8   : > { %v360_v12 = vpop.f32.mrf.mxu1 }
  0xb9   : > { %v361_v13 = vadd.f32 %v360_v12, %v337_v11 }
  0xbb   : > { %v367_v14 = vadd.f32 %v612_v10, %v361_v13 }
  0xbd   : > { %368 = vst [vmem:[%s301_s26] sm:$0xff] %v367_v14 }
  0xbe   : > { %730 = shalt.err (!%p727_p13)
}
  0xbf   : > { %540 = dma.vmem_to_hbm [thread:$0]  (%p894_p4), %s384_s27, 128, %s386_s28, %s370_s18  }
  0xc0 PF: > { %s397_s7 = sand.u32 1, %s773_s15   ;;  %p554_p0 = pnand %p516_p6, %p902_p7 }
  0xc1   : > { %s398_s13 = scalar_lea.sflag [#allocation4], %s397_s7 }
  0xc2   : > { %p555_p2 = pneg %p554_p0 }
  0xc4   : > { %768 = dma.done.wait (%p555_p2), %s398_s13, 128  }
  0xc5   : > { %770 = vsyncadd (%p555_p2), %s398_s13, 4294967168  ;;  %s23_s20 = sadd.s32 1, %s793_s20   ;;  %s1002_s2 = sld [smem:[#allocation13_spill]] }
  0xc6   : > { %p20_p5 = scmp.ge.s32.totalorder %s23_s20, 4   ;;  %s1003_s17 = sld [smem:[#allocation16_spill]] }
  0xc7   : > { %s1004_s18 = sld [smem:[#allocation14_spill]]  ;;  %s1006_s15 = smov %s777_s16 }
  0xc8   : > { %s1005_s19 = sld [smem:[#allocation15_spill]]  ;;  %22 = sbr.rel (!%p20_p5) target bundleno = 10 (0xa), region = 103 }
  0xcb   : > { %s1007_s16 = smov %s1002_s2 }
  0xcd   :  { %404 = vsyncpa [#allocation3], 1 }
  0xce   :  { %406 = vsyncpa [#allocation3 + $0x1], 1 }
  0xcf   :  { %407 = vsyncpa [#allocation6], 1 }
  0xd0   :  { %409 = vsyncpa [#allocation6 + $0x1], 1 }
  0xd1   :  { %410 = vsyncpa [#allocation4], 1 }
  0xd2   :  { %412 = vsyncpa [#allocation4 + $0x1], 1 }

</bundles_post_ra>
